<compile_context>
chip_gen: v5e
topology: v5e:2x2
jax: 0.10.0
libtpu: 0.0.40
codegen_flags: <defaults>
</compile_context>

<pallas_src>
import functools

import jax
import jax.numpy as jnp
from jax.experimental import pallas as pl
from jax.experimental.pallas import tpu as pltpu


def _identity_block_scale(block_num: int) -> float:
    """Coefficient of x in the last block's output when every block is Identity,
    every activation is identity and dropout is a no-op (the NAS DAG sums all
    earlier block outputs into each later block's input list)."""
    coeffs = []
    for i in range(block_num):
        coeffs.append(1.0 if i == 0 else float(sum(coeffs[:i])))
    return coeffs[-1]


def _tile_rows(n_rows: int, sublane: int, row_bytes: int) -> int:
    """Row tile: multiple of `sublane`, >=4 grid steps when possible, per-block
    footprint <= ~2 MiB (fits v5e's 16 MiB scoped VMEM with double buffering)."""
    if n_rows <= sublane:
        return n_rows
    cap = max(sublane, ((2 * 1024 * 1024) // max(row_bytes, 1)) // sublane * sublane)
    quarter = max(sublane, (n_rows // 4) // sublane * sublane)
    t = min(cap, quarter)
    # Prefer an even grid so v7x's two TensorCores get balanced work.
    if t > sublane and pl.cdiv(n_rows, t) > 1 and pl.cdiv(n_rows, t) % 2 == 1:
        t2 = t - sublane
        if pl.cdiv(n_rows, t2) % 2 == 0:
            t = t2
    return t


def _nasgnn_head_kernel(x_ref, w_ref, b_ref, o_ref, *, scale):
    # Identity-block DAG collapses to a scalar scale of the node features.
    y = x_ref[...].astype(jnp.float32) * scale
    # Row-wise log_softmax over the feature axis (dim=1 in the module).
    m = jnp.max(y, axis=-1, keepdims=True)
    z = y - m
    lse = jnp.log(jnp.sum(jnp.exp(z), axis=-1, keepdims=True))
    logp = z - lse
    # Post-MP linear head (MLP, 1 layer, bias=True) on the MXU.
    out = jnp.dot(logp, w_ref[...].astype(jnp.float32),
                  preferred_element_type=jnp.float32)
    out = out + b_ref[...].astype(jnp.float32)
    o_ref[...] = out.astype(o_ref.dtype)


def nasgnn_forward(node_feature, edge_index, post_mp_w, post_mp_b,
                   node_label, node_label_index, *, block_num=4, dropout=0.0):
    """NASGNN.forward for the all-Identity configuration (eval mode).

    Returns (pred, label) exactly like GNNNodeHead._apply_index.
    `edge_index` is accepted for interface fidelity but unused by Identity blocks.
    `dropout` is a no-op in eval mode (module default p=0.0).
    """
    del edge_index, dropout  # unused in the Identity / eval configuration
    n, d = node_feature.shape
    o = post_mp_w.shape[1]

    scale = _identity_block_scale(block_num)
    itemsize = jnp.dtype(node_feature.dtype).itemsize
    sublane = 32 // itemsize            # 8 (f32) / 16 (bf16) / 32 (int8/fp8)
    tile_n = _tile_rows(n, sublane, d * itemsize)
    grid = (pl.cdiv(n, tile_n),)

    kernel = functools.partial(_nasgnn_head_kernel, scale=float(scale))

    pred_all = pl.pallas_call(
        kernel,
        out_shape=jax.ShapeDtypeStruct((n, o), node_feature.dtype),
        grid_spec=pltpu.PrefetchScalarGridSpec(
            num_scalar_prefetch=0,
            grid=grid,
            in_specs=[
                pl.BlockSpec((tile_n, d), lambda i: (i, 0)),   # node features (row tile)
                pl.BlockSpec((d, o), lambda i: (0, 0)),        # post-MP weight (resident)
                pl.BlockSpec((1, o), lambda i: (0, 0)),        # post-MP bias   (resident)
            ],
            out_specs=pl.BlockSpec((tile_n, o), lambda i: (i, 0)),
        ),
        compiler_params=pltpu.CompilerParams(
            dimension_semantics=("parallel",)),
    )(node_feature, post_mp_w, post_mp_b.reshape(1, o))

    # GNNNodeHead._apply_index: gather labelled nodes (tiny; done outside the kernel).
    pred = jnp.take(pred_all, node_label_index, axis=0)
    if node_label_index.shape[0] == node_label.shape[0]:
        label = node_label
    else:
        label = jnp.take(node_label, node_label_index, axis=0)
    return pred, label


if __name__ == "__main__":
    key = jax.random.PRNGKey(0)
    k1, k2, k3, k4, k5, k6 = jax.random.split(key, 6)

    # Small graph: 32 nodes, hidden dim 32, 8 output classes, 64 edges, 8 labelled nodes.
    N, D, O, E, M = 32, 32, 8, 64, 8
    node_feature = jax.random.normal(k1, (N, D), dtype=jnp.float32)
    edge_index = jax.random.randint(k2, (2, E), 0, N, dtype=jnp.int32)  # unused by Identity blocks
    post_mp_w = jax.random.normal(k3, (D, O), dtype=jnp.float32) * 0.1
    post_mp_b = jax.random.normal(k4, (O,), dtype=jnp.float32) * 0.1
    node_label = jax.random.randint(k5, (N,), 0, O, dtype=jnp.int32)
    node_label_index = jax.random.permutation(k6, N)[:M].astype(jnp.int32)

    fwd = jax.jit(functools.partial(nasgnn_forward, block_num=4, dropout=0.0))
    pred, label = fwd(node_feature, edge_index, post_mp_w, post_mp_b,
                      node_label, node_label_index)
    pred, label = jax.block_until_ready((pred, label))

    # Pure-JAX reference of the same configuration.
    scale = _identity_block_scale(4)
    ref_logp = jax.nn.log_softmax(scale * node_feature, axis=1)
    ref_pred = (ref_logp @ post_mp_w + post_mp_b)[node_label_index]
    ref_label = node_label[node_label_index]

    assert pred.shape == (M, O) and label.shape == (M,)
    assert pred.dtype == node_feature.dtype
    assert bool(jnp.allclose(pred, ref_pred, atol=1e-3, rtol=1e-3))
    assert bool(jnp.all(label == ref_label))
    print("KERNEL_OK")
</pallas_src>

<mosaic_0001>
module attributes {stable_mosaic.version = 11 : i64} {
  func.func @_nasgnn_head_kernel(%arg0: i32, %arg1: memref<8x32xf32, #tpu.memory_space<vmem>>, %arg2: memref<32x8xf32, #tpu.memory_space<vmem>>, %arg3: memref<1x8xf32, #tpu.memory_space<vmem>>, %arg4: memref<8x8xf32, #tpu.memory_space<vmem>>) attributes {dimension_semantics = [#tpu.dimension_semantics<parallel>], iteration_bounds = array<i64: 4>, scalar_prefetch = 0 : i64, scratch_operands = 0 : i64, tpu.core_type = #tpu.core_type<tc>, window_params = [{transform_indices = @transform_0, window_bounds = array<i64: 8, 32>}, {pipeline_mode = #tpu.pipeline_mode<synchronous>, transform_indices = @transform_1, window_bounds = array<i64: 32, 8>}, {pipeline_mode = #tpu.pipeline_mode<synchronous>, transform_indices = @transform_2, window_bounds = array<i64: 1, 8>}, {transform_indices = @transform_3, window_bounds = array<i64: 8, 8>}]} {
    %c0 = arith.constant 0 : index
    %c0_0 = arith.constant 0 : index
    %0 = vector.load %arg1[%c0, %c0_0] : memref<8x32xf32, #tpu.memory_space<vmem>>, vector<8x32xf32>
    %cst = arith.constant 4.000000e+00 : f32
    %1 = vector.broadcast %cst : f32 to vector<8x32xf32>
    %2 = arith.mulf %0, %1 : vector<8x32xf32>
    %cst_1 = arith.constant dense<0xFF800000> : vector<8xf32>
    %3 = vector.multi_reduction <maximumf>, %2, %cst_1 [1] : vector<8x32xf32> to vector<8xf32>
    %4 = vector.shape_cast %3 : vector<8xf32> to vector<8x1xf32>
    %5 = vector.broadcast %4 : vector<8x1xf32> to vector<8x32xf32>
    %6 = arith.subf %2, %5 : vector<8x32xf32>
    %7 = math.exp %6 : vector<8x32xf32>
    %cst_2 = arith.constant dense<0.000000e+00> : vector<8xf32>
    %8 = vector.multi_reduction <add>, %7, %cst_2 [1] : vector<8x32xf32> to vector<8xf32>
    %9 = vector.shape_cast %8 : vector<8xf32> to vector<8x1xf32>
    %10 = math.log %9 : vector<8x1xf32>
    %11 = vector.broadcast %10 : vector<8x1xf32> to vector<8x32xf32>
    %12 = arith.subf %6, %11 : vector<8x32xf32>
    %c0_3 = arith.constant 0 : index
    %c0_4 = arith.constant 0 : index
    %13 = vector.load %arg2[%c0_3, %c0_4] : memref<32x8xf32, #tpu.memory_space<vmem>>, vector<32x8xf32>
    %cst_5 = arith.constant dense<0.000000e+00> : vector<8x8xf32>
    %14 = tpu.matmul %12, %13, %cst_5 {dimension_numbers = #tpu.dot_dimension_numbers<[1], [0], [0], [1], [0, 0, 1, 1], [], []>} : vector<8x32xf32>, vector<32x8xf32>, vector<8x8xf32> -> vector<8x8xf32>
    %c0_6 = arith.constant 0 : index
    %c0_7 = arith.constant 0 : index
    %15 = vector.load %arg3[%c0_6, %c0_7] : memref<1x8xf32, #tpu.memory_space<vmem>>, vector<1x8xf32>
    %16 = vector.broadcast %15 : vector<1x8xf32> to vector<8x8xf32>
    %17 = arith.addf %14, %16 : vector<8x8xf32>
    %c0_8 = arith.constant 0 : index
    %c0_9 = arith.constant 0 : index
    %18 = vector.load %arg4[%c0_8, %c0_9] : memref<8x8xf32, #tpu.memory_space<vmem>>, vector<8x8xf32>
    tpu.vector_store %arg4[%c0_8, %c0_9], %17 {strides = array<i32>} : memref<8x8xf32, #tpu.memory_space<vmem>>, vector<8x8xf32>,
    return
  }
  func.func @transform_0(%arg0: i32) -> (i32, i32) {
    %c0_i32 = arith.constant 0 : i32
    %c0_i32_0 = arith.constant 0 : i32
    return %arg0, %c0_i32 : i32, i32
  }
  func.func @transform_1(%arg0: i32) -> (i32, i32) {
    %c0_i32 = arith.constant 0 : i32
    %c0_i32_0 = arith.constant 0 : i32
    %c0_i32_1 = arith.constant 0 : i32
    return %c0_i32, %c0_i32_0 : i32, i32
  }
  func.func @transform_2(%arg0: i32) -> (i32, i32) {
    %c0_i32 = arith.constant 0 : i32
    %c0_i32_0 = arith.constant 0 : i32
    %c0_i32_1 = arith.constant 0 : i32
    return %c0_i32, %c0_i32_0 : i32, i32
  }
  func.func @transform_3(%arg0: i32) -> (i32, i32) {
    %c0_i32 = arith.constant 0 : i32
    %c0_i32_0 = arith.constant 0 : i32
    return %arg0, %c0_i32 : i32, i32
  }
}

</mosaic_0001>

<bundles_post_ra>
// kernel: nasgnn_forward.1
= control target key start
LH: loop header
LB: loop body
LE: loop exit
PB: predicated region body
PF: predicated region fallthrough
CT: control target
= control target key end

     0   :  { %s318_s12 = smov 0   ;;  %s360_s0 = inlined_call_operand.vmem [shape: f32[32,32], index: 0, kind: input, shape index: {}]   ;;  %s361_s1 = inlined_call_operand.vmem [shape: f32[32,8], index: 1, kind: input, shape index: {}]   ;;  %s362_s2 = inlined_call_operand.vmem [shape: f32[1,8], index: 2, kind: input, shape index: {}]   ;;  %s363_s3 = inlined_call_operand.vmem [shape: f32[32,8], index: 3, kind: output, shape index: {}]  }
   0x1 LB: > { %s267_s13 = sadd.s32 4294967295, %s296_s12   ;;  %p271_p0 = scmp.ge.s32.totalorder %s296_s12, 1  ;;  %s296_s12 = sphi %s318_s12, %s13_s12  }
   0x2   : > { %p136_p1 = scmp.lt.s32.totalorder %s296_s12, 5 }
   0x4   : > { %p137_p2 = pnand %p271_p0, %p136_p1 }
   0x5   : > { %p158_p3 = scmp.lt.s32.totalorder (!%p137_p2), %s267_s13, 3 }
   0x6   : > { %140 = sbr.rel (%p137_p2) target bundleno = 402 (0x192), region = 32 }
   0xb   : > { %s365_s13 = smov (!%p158_p3, %s267_s13), 3  ;;  %vm168_vm0 = vcmask 261120   ;;  %v184_v8 = vld [vmem:[%s361_s1 + $0x18] sm:$0xff]  ;;  %v183_v9 = vld [vmem:[%s361_s1 + $0x10] sm:$0xff]  ;;  %v182_v10 = vld [vmem:[%s361_s1 + $0x8] sm:$0xff]  ;;  %vm212_vm1 = vcmask 64512  }
   0xc   : > { %s272_s14 = sshll.u32 %s365_s13, 3  ;;  %204 = vmatpush.msra.mxu0 %v184_v8  ;;  %v181_v11 = vld [vmem:[%s361_s1] sm:$0xff] }
   0xd   : > { %s161_s17 = scalar_lea.vmem %s360_s0, %s272_s14  ;;  %v285_v16 = vld [vmem:[%s362_s2] ss:$0 sm:$0xff]  ;;  %s165_s30 = scalar_lea.vmem %s363_s3, %s272_s14 }
   0xe   : > { %v166_v0 = vld [vmem:[%s161_s17] sm:$0xff]  ;;  %205 = vmatpush.msra.mxu0 %v183_v9 }
   0xf   : > { %v167_v1 = vmul.f32 4.0, %v166_v0 }
  0x10   : > { %206 = vmatpush.msra.mxu0 %v182_v10 }
  0x11   : > { %v169_v2 = vsel %vm168_vm0, %v167_v1, -inf }
  0x12   : > { %170 = vmax.xlane.f32.xlu0 %v169_v2  ;;  %207 = vmatpush.msra.mxu0 %v181_v11 }
  0x85   : > { %v171_v3 = vpop.xlane.xlu0 %170 }
  0x86   : > { %v172_v4 = vsub.f32 %v167_v1, %v171_v3 }
  0x88   : > { %v173_v5 = vmul.f32 1.442695, %v172_v4 }
  0x8a   : > { %286 = vpow2.f32 %v173_v5 }
  0x90   : > { %v287_v6 = vpop.eup %286 }
  0x91   : > { %v175_v7 = vsel %vm168_vm0, %v287_v6, 0.0 }
  0x92   : > { %176 = vadd.xlane.f32.xlu0 %v175_v7 }
 0x105   : > { %v177_v12 = vpop.xlane.xlu0 %176 }
 0x106   : > { %288 = vlog2.f32 %v177_v12 }
 0x10c   : > { %v289_v13 = vpop.eup %288 }
 0x10d   : > { %v179_v14 = vmul.f32 0.6931472, %v289_v13 }
 0x10f   : > { %v180_v15 = vsub.f32 %v172_v4, %v179_v14 }
 0x111   : > { %274 = vmatmul.msk.f32.vlgmr.msra.gmra.mxu0 %vm168_vm0, %v180_v15 }
 0x18e   : > { %v209_v17 = vpop.f32.mrf.mxu0 }
 0x18f   : > { %v210_v18 = vadd.f32 %v285_v16, %v209_v17 }
 0x191   : > { %213 = vst.msk [vmem:[%s165_s30] sm:$0xff] %vm212_vm1, %v210_v18 }
 0x192 PF: > { %s13_s12 = sadd.s32 1, %s296_s12  }
 0x193   : > { %p10_p4 = scmp.ge.s32.totalorder %s13_s12, 6  }
 0x195   :  { %12 = sbr.rel (!%p10_p4) target bundleno = 1 (0x1), region = 62 }

</bundles_post_ra>
